<compile_context>
chip_gen: v7x
topology: tpu7x:2x2x1
jax: 0.10.0
libtpu: 0.0.40
codegen_flags: <defaults>
</compile_context>

<pallas_src>
import functools

import jax
import jax.numpy as jnp
from jax import lax
from jax.experimental import pallas as pl
from jax.experimental.pallas import tpu as pltpu


def _round_up(x: int, m: int) -> int:
    return ((x + m - 1) // m) * m


def _ae_kernel(x_ref, w_ref, b_enc_ref, b_dec_ref, enc_ref, dec_ref, dec_acc,
               *, activation_func: int):
    """One (batch-tile, hidden-tile) step of the fused encoder/decoder.

    x_ref:     [TB, D]   batch tile (constant over the hidden axis)
    w_ref:     [TH, D]   encoder weight tile (tied decoder weight)
    b_enc_ref: [1, TH]
    b_dec_ref: [1, D]
    enc_ref:   [TB, TH]  encoded output tile
    dec_ref:   [TB, D]   decoded output tile (resident across hidden axis)
    dec_acc:   [TB, D]   f32 VMEM accumulator for the decoder sum over H
    """
    h = pl.program_id(1)

    x = x_ref[...]
    w = w_ref[...]

    # Encoder: contract the input-feature axis of x and w (no weight transpose).
    pre = lax.dot_general(
        x, w,
        dimension_numbers=(((1,), (1,)), ((), ())),
        preferred_element_type=jnp.float32,
    ) + b_enc_ref[...]

    if activation_func == 0:
        enc = jax.nn.sigmoid(pre)
    elif activation_func == 1:
        enc = jnp.tanh(pre)
    else:  # activation_func == 2
        enc = jnp.maximum(pre, 0.0)

    enc_ref[...] = enc.astype(enc_ref.dtype)

    # Decoder (tied weights): accumulate enc_tile @ W_tile over the hidden axis.
    @pl.when(h == 0)
    def _():
        dec_acc[...] = jnp.zeros_like(dec_acc)

    dec_acc[...] += jnp.dot(enc, w, preferred_element_type=jnp.float32)

    @pl.when(h == pl.num_programs(1) - 1)
    def _():
        dec_ref[...] = (dec_acc[...] + b_dec_ref[...]).astype(dec_ref.dtype)


def autoencoder_forward(x, weight, b_enc, b_dec, activation_func=0,
                        block_b=256, block_h=512):
    """x: [B, D], weight: [H, D], b_enc: [1, H], b_dec: [1, D] -> (enc, dec)."""
    B, D = x.shape
    H = weight.shape[0]

    # TPU-friendly padded shapes / tile sizes ((8, 128) rule, lane-dense outputs).
    D_pad = _round_up(D, 128)
    TB = min(block_b, _round_up(B, 8))
    TH = min(block_h, _round_up(H, 128))
    B_pad = _round_up(B, TB)
    H_pad = _round_up(H, TH)

    # Zero padding is exact: padded weight rows/cols are zero, so they add
    # nothing to the decoder sum; padded enc columns / batch rows are sliced off.
    x_p = jnp.pad(x, ((0, B_pad - B), (0, D_pad - D)))
    w_p = jnp.pad(weight, ((0, H_pad - H), (0, D_pad - D)))
    b_enc_p = jnp.pad(b_enc, ((0, 0), (0, H_pad - H)))
    b_dec_p = jnp.pad(b_dec, ((0, 0), (0, D_pad - D)))

    kernel = functools.partial(_ae_kernel, activation_func=activation_func)

    enc_p, dec_p = pl.pallas_call(
        kernel,
        out_shape=(
            jax.ShapeDtypeStruct((B_pad, H_pad), x.dtype),
            jax.ShapeDtypeStruct((B_pad, D_pad), x.dtype),
        ),
        grid_spec=pltpu.PrefetchScalarGridSpec(
            num_scalar_prefetch=0,
            grid=(B_pad // TB, H_pad // TH),
            in_specs=[
                pl.BlockSpec((TB, D_pad), lambda i, h: (i, 0)),   # x tile
                pl.BlockSpec((TH, D_pad), lambda i, h: (h, 0)),   # weight tile
                pl.BlockSpec((1, TH), lambda i, h: (0, h)),       # b_enc tile
                pl.BlockSpec((1, D_pad), lambda i, h: (0, 0)),    # b_dec
            ],
            out_specs=[
                pl.BlockSpec((TB, TH), lambda i, h: (i, h)),      # encoded
                pl.BlockSpec((TB, D_pad), lambda i, h: (i, 0)),   # decoded (accum)
            ],
            scratch_shapes=[pltpu.VMEM((TB, D_pad), jnp.float32)],
        ),
        compiler_params=pltpu.CompilerParams(
            dimension_semantics=("parallel", "arbitrary")),
    )(x_p, w_p, b_enc_p, b_dec_p)

    return enc_p[:B, :H], dec_p[:B, :D]


def autoencoder_reference(x, weight, b_enc, b_dec, activation_func=0):
    pre = x @ weight.T + b_enc
    if activation_func == 0:
        enc = jax.nn.sigmoid(pre)
    elif activation_func == 1:
        enc = jnp.tanh(pre)
    else:
        enc = jnp.maximum(pre, 0.0)
    dec = enc @ weight + b_dec
    return enc, dec


if __name__ == "__main__":
    # Small shapes consistent with the module: Linear(input_dim -> hidden_dim).
    TYPES = 5
    batch, input_dim, hidden_dim = 8, 32, 16
    activation_func = 0  # 0: sigmoid (first branch in the module)

    key = jax.random.PRNGKey(0)
    k_x, k_w, k_bd = jax.random.split(key, 3)

    x = jax.random.normal(k_x, (batch, input_dim), dtype=jnp.float32)
    weight = jax.random.normal(k_w, (hidden_dim, input_dim), dtype=jnp.float32) * 0.1
    b_enc = jnp.zeros((1, hidden_dim), dtype=jnp.float32)   # bias = np.zeros([1, weight.shape[0]])
    b_dec = jax.random.normal(k_bd, (1, input_dim), dtype=jnp.float32) * 0.01

    # TODO(synk): `classifier` (self.clf = Linear(hidden_dim, TYPES)) is not part
    # of forward(); omitted from the kernel.

    enc, dec = autoencoder_forward(x, weight, b_enc, b_dec, activation_func)
    jax.block_until_ready((enc, dec))

    enc_ref, dec_ref = autoencoder_reference(x, weight, b_enc, b_dec, activation_func)
    assert jnp.allclose(enc, enc_ref, atol=1e-5, rtol=1e-5), "encoded mismatch"
    assert jnp.allclose(dec, dec_ref, atol=1e-5, rtol=1e-5), "decoded mismatch"

    print("KERNEL_OK")
</pallas_src>

<mosaic_0001>
module attributes {stable_mosaic.version = 11 : i64} {
  func.func @_ae_kernel(%arg0: i32, %arg1: i32, %arg2: memref<8x128xf32, #tpu.memory_space<vmem>>, %arg3: memref<128x128xf32, #tpu.memory_space<vmem>>, %arg4: memref<1x128xf32, #tpu.memory_space<vmem>>, %arg5: memref<1x128xf32, #tpu.memory_space<vmem>>, %arg6: memref<8x128xf32, #tpu.memory_space<vmem>>, %arg7: memref<8x128xf32, #tpu.memory_space<vmem>>, %arg8: memref<8x128xf32, #tpu.memory_space<vmem>>) attributes {dimension_semantics = [#tpu.dimension_semantics<parallel>, #tpu.dimension_semantics<arbitrary>], iteration_bounds = array<i64: 1, 1>, scalar_prefetch = 0 : i64, scratch_operands = 1 : i64, tpu.core_type = #tpu.core_type<tc>, window_params = [{transform_indices = @transform_0, window_bounds = array<i64: 8, 128>}, {transform_indices = @transform_1, window_bounds = array<i64: 128, 128>}, {transform_indices = @transform_2, window_bounds = array<i64: 1, 128>}, {pipeline_mode = #tpu.pipeline_mode<synchronous>, transform_indices = @transform_3, window_bounds = array<i64: 1, 128>}, {transform_indices = @transform_4, window_bounds = array<i64: 8, 128>}, {transform_indices = @transform_5, window_bounds = array<i64: 8, 128>}]} {
    %c0 = arith.constant 0 : index
    %c0_0 = arith.constant 0 : index
    %0 = vector.load %arg2[%c0, %c0_0] : memref<8x128xf32, #tpu.memory_space<vmem>>, vector<8x128xf32>
    %c0_1 = arith.constant 0 : index
    %c0_2 = arith.constant 0 : index
    %1 = vector.load %arg3[%c0_1, %c0_2] : memref<128x128xf32, #tpu.memory_space<vmem>>, vector<128x128xf32>
    %cst = arith.constant dense<0.000000e+00> : vector<8x128xf32>
    %2 = tpu.matmul %0, %1, %cst {dimension_numbers = #tpu.dot_dimension_numbers<[1], [1], [0], [0], [0, 0, 1, 0], [], []>} : vector<8x128xf32>, vector<128x128xf32>, vector<8x128xf32> -> vector<8x128xf32>
    %c0_3 = arith.constant 0 : index
    %c0_4 = arith.constant 0 : index
    %3 = vector.load %arg4[%c0_3, %c0_4] : memref<1x128xf32, #tpu.memory_space<vmem>>, vector<1x128xf32>
    %4 = vector.broadcast %3 : vector<1x128xf32> to vector<8x128xf32>
    %5 = arith.addf %2, %4 : vector<8x128xf32>
    %6 = arith.negf %5 : vector<8x128xf32>
    %7 = math.exp %6 : vector<8x128xf32>
    %cst_5 = arith.constant 1.000000e+00 : f32
    %8 = vector.broadcast %cst_5 : f32 to vector<8x128xf32>
    %9 = arith.addf %8, %7 : vector<8x128xf32>
    %10 = arith.divf %8, %9 : vector<8x128xf32>
    %c0_6 = arith.constant 0 : index
    %c0_7 = arith.constant 0 : index
    %11 = vector.load %arg6[%c0_6, %c0_7] : memref<8x128xf32, #tpu.memory_space<vmem>>, vector<8x128xf32>
    tpu.vector_store %arg6[%c0_6, %c0_7], %10 {strides = array<i32>} : memref<8x128xf32, #tpu.memory_space<vmem>>, vector<8x128xf32>,
    %c0_i32 = arith.constant 0 : i32
    %12 = arith.cmpi eq, %arg1, %c0_i32 : i32
    %13 = arith.extui %12 : i1 to i32
    %c0_i32_8 = arith.constant 0 : i32
    %14 = arith.cmpi ne, %13, %c0_i32_8 : i32
    scf.if %14 {
      %cst_16 = arith.constant 0.000000e+00 : f32
      %22 = vector.broadcast %cst_16 : f32 to vector<8x128xf32>
      %c0_17 = arith.constant 0 : index
      %c0_18 = arith.constant 0 : index
      %23 = vector.load %arg8[%c0_17, %c0_18] : memref<8x128xf32, #tpu.memory_space<vmem>>, vector<8x128xf32>
      tpu.vector_store %arg8[%c0_17, %c0_18], %22 {strides = array<i32>} : memref<8x128xf32, #tpu.memory_space<vmem>>, vector<8x128xf32>,
    } else {
    }
    %c0_9 = arith.constant 0 : index
    %c0_10 = arith.constant 0 : index
    %15 = vector.load %arg8[%c0_9, %c0_10] : memref<8x128xf32, #tpu.memory_space<vmem>>, vector<8x128xf32>
    %cst_11 = arith.constant dense<0.000000e+00> : vector<8x128xf32>
    %16 = tpu.matmul %10, %1, %cst_11 {dimension_numbers = #tpu.dot_dimension_numbers<[1], [0], [0], [1], [0, 0, 1, 1], [], []>} : vector<8x128xf32>, vector<128x128xf32>, vector<8x128xf32> -> vector<8x128xf32>
    %17 = arith.addf %15, %16 : vector<8x128xf32>
    %c0_12 = arith.constant 0 : index
    %c0_13 = arith.constant 0 : index
    %18 = vector.load %arg8[%c0_12, %c0_13] : memref<8x128xf32, #tpu.memory_space<vmem>>, vector<8x128xf32>
    tpu.vector_store %arg8[%c0_12, %c0_13], %17 {strides = array<i32>} : memref<8x128xf32, #tpu.memory_space<vmem>>, vector<8x128xf32>,
    %c0_i32_14 = arith.constant 0 : i32
    %19 = arith.cmpi eq, %arg1, %c0_i32_14 : i32
    %20 = arith.extui %19 : i1 to i32
    %c0_i32_15 = arith.constant 0 : i32
    %21 = arith.cmpi ne, %20, %c0_i32_15 : i32
    scf.if %21 {
      %c0_16 = arith.constant 0 : index
      %c0_17 = arith.constant 0 : index
      %22 = vector.load %arg8[%c0_16, %c0_17] : memref<8x128xf32, #tpu.memory_space<vmem>>, vector<8x128xf32>
      %c0_18 = arith.constant 0 : index
      %c0_19 = arith.constant 0 : index
      %23 = vector.load %arg5[%c0_18, %c0_19] : memref<1x128xf32, #tpu.memory_space<vmem>>, vector<1x128xf32>
      %24 = vector.broadcast %23 : vector<1x128xf32> to vector<8x128xf32>
      %25 = arith.addf %22, %24 : vector<8x128xf32>
      %c0_20 = arith.constant 0 : index
      %c0_21 = arith.constant 0 : index
      %26 = vector.load %arg7[%c0_20, %c0_21] : memref<8x128xf32, #tpu.memory_space<vmem>>, vector<8x128xf32>
      tpu.vector_store %arg7[%c0_20, %c0_21], %25 {strides = array<i32>} : memref<8x128xf32, #tpu.memory_space<vmem>>, vector<8x128xf32>,
    } else {
    }
    return
  }
  func.func @transform_0(%arg0: i32, %arg1: i32) -> (i32, i32) {
    %c0_i32 = arith.constant 0 : i32
    %c0_i32_0 = arith.constant 0 : i32
    return %arg0, %c0_i32 : i32, i32
  }
  func.func @transform_1(%arg0: i32, %arg1: i32) -> (i32, i32) {
    %c0_i32 = arith.constant 0 : i32
    %c0_i32_0 = arith.constant 0 : i32
    return %arg1, %c0_i32 : i32, i32
  }
  func.func @transform_2(%arg0: i32, %arg1: i32) -> (i32, i32) {
    %c0_i32 = arith.constant 0 : i32
    %c0_i32_0 = arith.constant 0 : i32
    return %c0_i32, %arg1 : i32, i32
  }
  func.func @transform_3(%arg0: i32, %arg1: i32) -> (i32, i32) {
    %c0_i32 = arith.constant 0 : i32
    %c0_i32_0 = arith.constant 0 : i32
    %c0_i32_1 = arith.constant 0 : i32
    return %c0_i32, %c0_i32_0 : i32, i32
  }
  func.func @transform_4(%arg0: i32, %arg1: i32) -> (i32, i32) {
    %c0_i32 = arith.constant 0 : i32
    return %arg0, %arg1 : i32, i32
  }
  func.func @transform_5(%arg0: i32, %arg1: i32) -> (i32, i32) {
    %c0_i32 = arith.constant 0 : i32
    %c0_i32_0 = arith.constant 0 : i32
    return %arg0, %c0_i32 : i32, i32
  }
}

</mosaic_0001>

<bundles_post_ra>
// kernel: tpu_custom_call.1
= control target key start
LH: loop header
LB: loop body
LE: loop exit
PB: predicated region body
PF: predicated region fallthrough
CT: control target
= control target key end

     0   :  { %11 = vsyncpa [#allocation4], 0  ;;  %s633_s0 = inlined_call_operand.hbm [shape: f32[8,128], index: 0, kind: input, shape index: {}]   ;;  %s634_s1 = inlined_call_operand.hbm [shape: f32[128,128], index: 1, kind: input, shape index: {}]   ;;  %s635_s2 = inlined_call_operand.vmem [shape: f32[1,128], index: 2, kind: input, shape index: {}]   ;;  %s636_s3 = inlined_call_operand.vmem [shape: f32[1,128], index: 3, kind: input, shape index: {}]   ;;  %s637_s4 = inlined_call_operand.hbm [shape: f32[8,128], index: 4, kind: output, shape index: {0}]   ;;  %s638_s5 = inlined_call_operand.hbm [shape: f32[8,128], index: 5, kind: output, shape index: {1}]  }
   0x1   :  { %12 = vsyncpa [#allocation7], 0 }
   0x2   :  { %13 = vsyncpa [#allocation5], 0 }
   0x3   :  { %14 = vsyncpa [#allocation10], 0  ;;  %s533_s18 = smov [#allocation3]   ;;  %s534_s20 = smov [#allocation6]  }
   0x4   :  { %s21_s19 = sshll.u32 %s533_s18, 4  ;;  %s30_s21 = sshll.u32 %s534_s20, 4  ;;  %s22_s19 = int_to_ptr.vmem [resolvable:$true] %s21_s19  ;;  %s572_s21 = int_to_ptr.vmem [resolvable:$true] %s30_s21 }
   0x5   :  { %s437_s24 = scalar_lea.hbm %s633_s0, 128 }
   0x6   :  { %p438_p0 = scmp.ne.s32.totalorder %s633_s0, %s437_s24  ;;  %p441_p1 = scmp.lt.u32.totalorder %s437_s24, %s633_s0 }
   0x8   :  { %p443_p2 = pnand %p441_p1, %p438_p0 }
   0xa   :  { %446 = shalt.err (!%p443_p2)
}
   0xb   :  { %s447_s29 = scalar_lea.vmem %s22_s19, 128  ;;  %p452_p4 = scmp.lt.s32.totalorder %s22_s19, %s22_s19 }
   0xc   :  { %p448_p3 = scmp.ne.s32.totalorder %s22_s19, %s447_s29  ;;  %p453_p5 = scmp.lt.s32.totalorder %s447_s29, %s447_s29 }
   0xe   :  { %p454_p6 = por %p453_p5, %p452_p4 }
  0x10   :  { %p455_p7 = pnand %p454_p6, %p448_p3 }
  0x12   :  { %458 = shalt.err (!%p455_p7)
}
  0x13   :  { %24 = dma.hbm_to_vmem [thread:$0]  %s633_s0, 128, %s22_s19, [#allocation4]  }
  0x14   :  { %s459_s9 = scalar_lea.hbm %s634_s1, 2048 }
  0x15   :  { %p460_p8 = scmp.ne.s32.totalorder %s634_s1, %s459_s9  ;;  %p463_p9 = scmp.lt.u32.totalorder %s459_s9, %s634_s1 }
  0x17   :  { %p465_p10 = pnand %p463_p9, %p460_p8 }
  0x19   :  { %468 = shalt.err (!%p465_p10)
}
  0x1a   :  { %s469_s14 = scalar_lea.vmem %s572_s21, 2048  ;;  %p474_p12 = scmp.lt.s32.totalorder %s572_s21, %s572_s21 }
  0x1b   :  { %p470_p11 = scmp.ne.s32.totalorder %s572_s21, %s469_s14  ;;  %p475_p13 = scmp.lt.s32.totalorder %s469_s14, %s469_s14 }
  0x1d   :  { %p476_p0 = por %p475_p13, %p474_p12 }
  0x1f   :  { %p477_p1 = pnand %p476_p0, %p470_p11 }
  0x21   :  { %480 = shalt.err (!%p477_p1)
}
  0x22   :  { %s535_s0 = smov 128   ;;  %s536_s15 = smov 8  }
  0x23   :  { %36 = dma.hbm_to_vmem [thread:$0]  %s634_s1, 2048, %s572_s21, [#allocation7], %s535_s0, %s535_s0, %s536_s15  }
  0x24   :  { %525 = dma.done.wait [#allocation4], 128  }
  0x25   :  { %526 = vsyncadd [#allocation4], 4294967168 }
  0x26   :  { %527 = dma.done.wait [#allocation7], 2048  }
  0x27   :  { %528 = vsyncadd [#allocation7], 4294965248  ;;  %v537_v0 = vmov 0.0|0.0   ;;  %vm538_vm0 = vmmov 0   ;;  %v539_v1 = vmov 0.0   ;;  %v48_v2 = vld [vmem:[#allocation6] sm:$0xff] }
  0x28   :  { %376 = vmatprep.subr.bf16.mxu0 %v537_v0  ;;  %338 = vmatprep.mubr.msk.f32.mxu0 %vm538_vm0, %v539_v1  ;;  %v49_v3 = vld [vmem:[#allocation6 + $0x8] sm:$0xff]  ;;  %v50_v5 = vld [vmem:[#allocation6 + $0x10] sm:$0xff]  ;;  %v51_v6 = vld [vmem:[#allocation6 + $0x18] sm:$0xff]  ;;  %s540_s19 = smov [#allocation8]  }
  0x29   :  { %400 = vmatprep.subr.bf16.mxu1 %v537_v0  ;;  %373 = vmatprep.mubr.msk.f32.mxu1 %vm538_vm0, %v539_v1  ;;  %v377_v4 = vpack.c.bf16 %v49_v3, %v48_v2  ;;  %v380_v7 = vpack.c.bf16 %v51_v6, %v50_v5  ;;  %v52_v8 = vld [vmem:[#allocation6 + $0x20] sm:$0xff]  ;;  %v53_v9 = vld [vmem:[#allocation6 + $0x28] sm:$0xff]  ;;  %v54_v11 = vld [vmem:[#allocation6 + $0x30] sm:$0xff]  ;;  %s245_s20 = sshll.u32 %s540_s19, 4  ;;  %s246_s20 = int_to_ptr.vmem [resolvable:$true] %s245_s20 }
  0x2a   :  { %v383_v10 = vpack.c.bf16 %v53_v9, %v52_v8  ;;  %v55_v12 = vld [vmem:[#allocation6 + $0x38] sm:$0xff]  ;;  %v56_v14 = vld [vmem:[#allocation6 + $0x40] sm:$0xff]  ;;  %v57_v15 = vld [vmem:[#allocation6 + $0x48] sm:$0xff]  ;;  %s481_s21 = scalar_lea.vmem %s246_s20, 128  ;;  %p486_p3 = scmp.lt.s32.totalorder %s246_s20, %s246_s20 }
  0x2b   :  { %378 = vmatpush3.bf16.xpose.msra.mxu0 %v377_v4  ;;  %402 = vmatpush3.bf16.msra.mxu1 %v377_v4  ;;  %v386_v13 = vpack.c.bf16 %v55_v12, %v54_v11  ;;  %v389_v16 = vpack.c.bf16 %v57_v15, %v56_v14  ;;  %v58_v17 = vld [vmem:[#allocation6 + $0x50] sm:$0xff]  ;;  %v59_v18 = vld [vmem:[#allocation6 + $0x58] sm:$0xff]  ;;  %v60_v20 = vld [vmem:[#allocation6 + $0x60] sm:$0xff]  ;;  %p482_p2 = scmp.ne.s32.totalorder %s246_s20, %s481_s21  ;;  %p487_p4 = scmp.lt.s32.totalorder %s481_s21, %s481_s21 }
  0x2c   :  { %379 = vmatprep.subr.bf16.mxu0 %v537_v0  ;;  %403 = vmatprep.subr.bf16.mxu1 %v537_v0  ;;  %v392_v19 = vpack.c.bf16 %v59_v18, %v58_v17  ;;  %v61_v21 = vld [vmem:[#allocation6 + $0x68] sm:$0xff]  ;;  %v62_v23 = vld [vmem:[#allocation6 + $0x70] sm:$0xff]  ;;  %v63_v24 = vld [vmem:[#allocation6 + $0x78] sm:$0xff] }
  0x2d   :  { %v395_v22 = vpack.c.bf16 %v61_v21, %v60_v20  ;;  %v398_v25 = vpack.c.bf16 %v63_v24, %v62_v23  ;;  %v47_v26 = vld [vmem:[#allocation3] sm:$0xff]  ;;  %p488_p5 = por %p487_p4, %p486_p3 }
  0x2e   :  { %v269_v27 = vld [vmem:[%s635_s2] ss:$0 sm:$0xff] }
  0x2f   :  { %405 = vmatpush3.bf16.msra.mxu1 %v380_v7  ;;  %p489_p6 = pnand %p488_p5, %p482_p2 }
  0x30   :  { %406 = vmatprep.subr.bf16.mxu1 %v537_v0 }
  0x33   :  { %381 = vmatpush3.bf16.xpose.msra.mxu0 %v380_v7  ;;  %408 = vmatpush3.bf16.msra.mxu1 %v383_v10 }
  0x34   :  { %382 = vmatprep.subr.bf16.mxu0 %v537_v0  ;;  %409 = vmatprep.subr.bf16.mxu1 %v537_v0 }
  0x37   :  { %411 = vmatpush3.bf16.msra.mxu1 %v386_v13 }
  0x38   :  { %412 = vmatprep.subr.bf16.mxu1 %v537_v0 }
  0x3b   :  { %384 = vmatpush3.bf16.xpose.msra.mxu0 %v383_v10  ;;  %414 = vmatpush3.bf16.msra.mxu1 %v389_v16 }
  0x3c   :  { %385 = vmatprep.subr.bf16.mxu0 %v537_v0  ;;  %415 = vmatprep.subr.bf16.mxu1 %v537_v0 }
  0x3f   :  { %417 = vmatpush3.bf16.msra.mxu1 %v392_v19 }
  0x40   :  { %418 = vmatprep.subr.bf16.mxu1 %v537_v0 }
  0x43   :  { %387 = vmatpush3.bf16.xpose.msra.mxu0 %v386_v13  ;;  %420 = vmatpush3.bf16.msra.mxu1 %v395_v22 }
  0x44   :  { %388 = vmatprep.subr.bf16.mxu0 %v537_v0  ;;  %421 = vmatprep.subr.bf16.mxu1 %v537_v0 }
  0x47   :  { %423 = vmatpush3.bf16.msra.mxu1 %v398_v25 }
  0x4b   :  { %390 = vmatpush3.bf16.xpose.msra.mxu0 %v389_v16 }
  0x4c   :  { %391 = vmatprep.subr.bf16.mxu0 %v537_v0 }
  0x53   :  { %393 = vmatpush3.bf16.xpose.msra.mxu0 %v392_v19 }
  0x54   :  { %394 = vmatprep.subr.bf16.mxu0 %v537_v0 }
  0x5b   :  { %396 = vmatpush3.bf16.xpose.msra.mxu0 %v395_v22 }
  0x5c   :  { %397 = vmatprep.subr.bf16.mxu0 %v537_v0 }
  0x63   :  { %399 = vmatpush3.bf16.xpose.msra.mxu0 %v398_v25 }
  0x6a   :  { %339 = vmatmul.mubr.f32.vlgmr.msra.gmra.mrb[0].mxu0 %v47_v26 }
 0x13d   :  { %v137_v28 = vpop.f32.mrb[0].mxu0 }
 0x13e   :  { %v138_v29 = vadd.f32 %v269_v27, %v137_v28  ;;  %v340_v30 = vpop.f32.mrb[1].mxu0 }
 0x140   :  { %v270_v31 = vmul.f32 -1.442695, %v138_v29 }
 0x142   :  { %433 = vpow2.f32 %v270_v31 }
 0x14c   :  { %v434_v32 = vpop.eup %433 }
 0x14d   :  { %v144_v33 = vadd.f32 1.0, %v434_v32 }
 0x14f   :  { %435 = vrcp.f32 %v144_v33 }
 0x159   :  { %v436_v34 = vpop.eup %435 }
 0x15a   :  { %147 = vst [vmem:[#allocation8] sm:$0xff] %v436_v34  ;;  %374 = vmatmul.mubr.f32.vlgmr.msra.gmra.mrb[0].mxu1 %v436_v34 }
 0x15b   :  { %492 = shalt.err (!%p489_p6)
}
 0x15c   :  { %s493_s23 = scalar_lea.hbm %s637_s4, 128 }
 0x15d   :  { %p494_p7 = scmp.ne.s32.totalorder %s637_s4, %s493_s23  ;;  %p497_p8 = scmp.lt.u32.totalorder %s493_s23, %s637_s4 }
 0x15f   :  { %p499_p9 = pnand %p497_p8, %p494_p7 }
 0x161   :  { %502 = shalt.err (!%p499_p9)
}
 0x162   :  { %248 = dma.vmem_to_hbm [thread:$0]  %s246_s20, 128, %s637_s4, [#allocation5]   ;;  %v271_v35 = vld [vmem:[%s636_s3] ss:$0 sm:$0xff] }
 0x163   :  { %s541_s7 = smov [#allocation9]  }
 0x164   :  { %s255_s8 = sshll.u32 %s541_s7, 4  ;;  %s256_s8 = int_to_ptr.vmem [resolvable:$true] %s255_s8 }
 0x165   :  { %s503_s9 = scalar_lea.vmem %s256_s8, 128  ;;  %p508_p11 = scmp.lt.s32.totalorder %s256_s8, %s256_s8 }
 0x166   :  { %p504_p10 = scmp.ne.s32.totalorder %s256_s8, %s503_s9  ;;  %p509_p12 = scmp.lt.s32.totalorder %s503_s9, %s503_s9 }
 0x168   :  { %p510_p13 = por %p509_p12, %p508_p11 }
 0x16a   :  { %p511_p0 = pnand %p510_p13, %p504_p10 }
 0x22d   :  { %v220_v36 = vpop.f32.mrb[0].mxu1 }
 0x22e   :  { %v237_v37 = vadd.f32 %v271_v35, %v220_v36  ;;  %v375_v38 = vpop.f32.mrb[1].mxu1 }
 0x230   :  { %238 = vst [vmem:[#allocation9] sm:$0xff] %v237_v37 }
 0x231   :  { %514 = shalt.err (!%p511_p0)
}
 0x232   :  { %s515_s11 = scalar_lea.hbm %s638_s5, 128 }
 0x233   :  { %p516_p1 = scmp.ne.s32.totalorder %s638_s5, %s515_s11  ;;  %p519_p2 = scmp.lt.u32.totalorder %s515_s11, %s638_s5 }
 0x235   :  { %p521_p3 = pnand %p519_p2, %p516_p1 }
 0x237   :  { %524 = shalt.err (!%p521_p3)
}
 0x238   :  { %258 = dma.vmem_to_hbm [thread:$0]  %s256_s8, 128, %s638_s5, [#allocation10]  }
 0x239   :  { %529 = dma.done.wait [#allocation5], 128  }
 0x23a   :  { %530 = vsyncadd [#allocation5], 4294967168 }
 0x23b   :  { %531 = dma.done.wait [#allocation10], 128  }
 0x23c   :  { %532 = vsyncadd [#allocation10], 4294967168 }
 0x23d   :  { %265 = vsyncpa [#allocation4], 1 }
 0x23e   :  { %266 = vsyncpa [#allocation7], 1 }
 0x23f   :  { %267 = vsyncpa [#allocation5], 1 }
 0x240   :  { %268 = vsyncpa [#allocation10], 1 }

</bundles_post_ra>
